<compile_context>
chip_gen: v6e
topology: v6e:2x2x1
jax: 0.10.0
libtpu: 0.0.40
codegen_flags: <defaults>
</compile_context>

<pallas_src>
import jax
import jax.numpy as jnp
from jax.experimental import pallas as pl
from jax.experimental.pallas import tpu as pltpu


STATE_DIM = 6
HIDDEN_WIDTH = 32
N_SHOT = 11

_LANE = 128
_TB_MAX = 1024         # up to 1024-lane batch tiles for large B
_MASK_BIAS = -1.0e30   # softmax mask for padded logit rows


def _actor_critic_forward_kernel(x_ref, w_ref, b_ref, out_ref):
    # x_ref: (STATE_DIM, TB)  w_ref: (4, H, H)  b_ref: (H, 4)  out_ref: (N_SHOT, TB)
    x = x_ref[...]
    b = b_ref[...]

    # shot_actor: Linear -> Tanh -> Linear -> Tanh -> Linear -> Tanh
    w1 = w_ref[0, :, 0:STATE_DIM]                       # (H, STATE_DIM), static slice
    h = jnp.tanh(
        jnp.dot(w1, x, preferred_element_type=jnp.float32) + b[:, 0:1]
    )
    h = jnp.tanh(
        jnp.dot(w_ref[1, :, :], h, preferred_element_type=jnp.float32) + b[:, 1:2]
    )
    h = jnp.tanh(
        jnp.dot(w_ref[2, :, :], h, preferred_element_type=jnp.float32) + b[:, 2:3]
    )

    # shot head: Linear(H, 11) -> Softmax(dim=-1)
    # Padded rows (11..31) have zero weights and -1e30 bias -> exp() == 0.
    logits = jnp.dot(w_ref[3, :, :], h, preferred_element_type=jnp.float32) + b[:, 3:4]
    m = jnp.max(logits, axis=0, keepdims=True)
    e = jnp.exp(logits - m)
    denom = jnp.sum(e, axis=0, keepdims=True)
    # exact reciprocal keeps the 1e-5 allclose / sum-to-1 guarantees
    probs = e * pl.reciprocal(denom, approx=False)
    out_ref[...] = probs[0:N_SHOT, :]


def pack_params(params):
    """Pack the 4 (w, b) pairs into one weight slab and one bias slab.

    Weights in `params` are stored (in, out); slabs store them (out, in) so the
    kernel computes W @ x with batch on the lane axis.
    """
    (w1, b1), (w2, b2), (w3, b3), (w4, b4) = params
    H = HIDDEN_WIDTH
    w_slab = jnp.zeros((4, H, H), jnp.float32)
    w_slab = w_slab.at[0, :, :STATE_DIM].set(w1.T)
    w_slab = w_slab.at[1].set(w2.T)
    w_slab = w_slab.at[2].set(w3.T)
    w_slab = w_slab.at[3, :N_SHOT, :].set(w4.T)

    b_slab = jnp.zeros((H, 4), jnp.float32)
    b_slab = b_slab.at[:, 0].set(b1[0])
    b_slab = b_slab.at[:, 1].set(b2[0])
    b_slab = b_slab.at[:, 2].set(b3[0])
    b_col4 = jnp.full((H,), _MASK_BIAS, jnp.float32).at[:N_SHOT].set(b4[0])
    b_slab = b_slab.at[:, 3].set(b_col4)
    return w_slab, b_slab


def _run_packed(x_t_pad, w_slab, b_slab):
    state_dim, b_pad = x_t_pad.shape
    tb = min(_TB_MAX, b_pad)
    grid = (b_pad // tb,)
    return pl.pallas_call(
        _actor_critic_forward_kernel,
        out_shape=jax.ShapeDtypeStruct((N_SHOT, b_pad), jnp.float32),
        grid=grid,
        in_specs=[
            # batch-tiled state (lane-dense), double-buffered by Pallas
            pl.BlockSpec((state_dim, tb), lambda i: (0, i)),
            # param slabs: same block every step -> VMEM resident
            pl.BlockSpec(w_slab.shape, lambda i: (0, 0, 0)),
            pl.BlockSpec(b_slab.shape, lambda i: (0, 0)),
        ],
        out_specs=pl.BlockSpec((N_SHOT, tb), lambda i: (0, i)),
        compiler_params=pltpu.CompilerParams(
            dimension_semantics=("parallel",),  # 2x on v7x (2 TCs); no-op on v5e/v6e
        ),
    )(x_t_pad, w_slab, b_slab)


@jax.jit
def actor_critic_forward(state, params):
    """ActorCritic.forward(state) == softmax(shot(shot_actor(state))); (B, 11)."""
    B = state.shape[0]
    w_slab, b_slab = pack_params(params)

    # Batch on the lane axis; pad batch to a multiple of the lane tile.
    x_t = state.astype(jnp.float32).T                     # (STATE_DIM, B)
    tb = min(_TB_MAX, pl.cdiv(B, _LANE) * _LANE)
    b_pad = pl.cdiv(B, tb) * tb
    if b_pad != B:
        x_t = jnp.pad(x_t, ((0, 0), (0, b_pad - B)))      # zero pad -> finite, discarded

    out_t = _run_packed(x_t, w_slab, b_slab)              # (N_SHOT, b_pad)
    return out_t[:, :B].T                                 # (B, N_SHOT)


def init_params(key, state_dim=STATE_DIM, hidden=HIDDEN_WIDTH, n_shot=N_SHOT):
    """Deterministic synthetic params. Weights stored as (in, out)."""
    dims = [(state_dim, hidden), (hidden, hidden), (hidden, hidden), (hidden, n_shot)]
    params = []
    for (fan_in, fan_out) in dims:
        key, kw, kb = jax.random.split(key, 3)
        bound = 1.0 / jnp.sqrt(fan_in)  # PyTorch Linear default init range
        w = jax.random.uniform(kw, (fan_in, fan_out), jnp.float32, -bound, bound)
        b = jax.random.uniform(kb, (1, fan_out), jnp.float32, -bound, bound)
        params.append((w, b))
    return params


def reference_forward(state, params):
    x = state
    (w1, b1), (w2, b2), (w3, b3), (w4, b4) = params
    x = jnp.tanh(x @ w1 + b1)
    x = jnp.tanh(x @ w2 + b2)
    x = jnp.tanh(x @ w3 + b3)
    logits = x @ w4 + b4
    return jax.nn.softmax(logits, axis=-1)


if __name__ == "__main__":
    key = jax.random.PRNGKey(0)
    key, k_state, k_big = jax.random.split(key, 3)
    params = init_params(key)

    # Small batch (matches the original test).
    B = 8
    state = jax.random.normal(k_state, (B, STATE_DIM), jnp.float32)
    out = jax.block_until_ready(actor_critic_forward(state, params))
    ref = reference_forward(state, params)
    assert out.shape == (B, N_SHOT)
    assert jnp.allclose(out, ref, atol=1e-5, rtol=1e-5)
    assert jnp.allclose(jnp.sum(out, axis=-1), 1.0, atol=1e-5)

    # Larger ragged batch: exercises lane padding + a single 768-lane tile.
    B2 = 700
    state2 = jax.random.normal(k_big, (B2, STATE_DIM), jnp.float32)
    out2 = jax.block_until_ready(actor_critic_forward(state2, params))
    ref2 = reference_forward(state2, params)
    assert out2.shape == (B2, N_SHOT)
    assert jnp.allclose(out2, ref2, atol=1e-5, rtol=1e-5)
    assert jnp.allclose(jnp.sum(out2, axis=-1), 1.0, atol=1e-5)

    # Multi-step batch grid: exercises grid=(3,) with tb=1024.
    B3 = 3 * _TB_MAX
    state3 = jax.random.normal(jax.random.PRNGKey(7), (B3, STATE_DIM), jnp.float32)
    out3 = jax.block_until_ready(actor_critic_forward(state3, params))
    ref3 = reference_forward(state3, params)
    assert out3.shape == (B3, N_SHOT)
    assert jnp.allclose(out3, ref3, atol=1e-5, rtol=1e-5)

    print("KERNEL_OK")
</pallas_src>

<mosaic_0001>
module attributes {stable_mosaic.version = 11 : i64} {
  func.func @_actor_critic_forward_kernel(%arg0: i32, %arg1: memref<6x128xf32, #tpu.memory_space<vmem>>, %arg2: memref<4x32x32xf32, #tpu.memory_space<vmem>>, %arg3: memref<32x4xf32, #tpu.memory_space<vmem>>, %arg4: memref<11x128xf32, #tpu.memory_space<vmem>>) attributes {dimension_semantics = [#tpu.dimension_semantics<parallel>], iteration_bounds = array<i64: 1>, scalar_prefetch = 0 : i64, scratch_operands = 0 : i64, tpu.core_type = #tpu.core_type<tc>, window_params = [{transform_indices = @transform_0, window_bounds = array<i64: 6, 128>}, {pipeline_mode = #tpu.pipeline_mode<synchronous>, transform_indices = @transform_1, window_bounds = array<i64: 4, 32, 32>}, {pipeline_mode = #tpu.pipeline_mode<synchronous>, transform_indices = @transform_2, window_bounds = array<i64: 32, 4>}, {transform_indices = @transform_3, window_bounds = array<i64: 11, 128>}]} {
    %c0 = arith.constant 0 : index
    %c0_0 = arith.constant 0 : index
    %0 = vector.load %arg1[%c0, %c0_0] : memref<6x128xf32, #tpu.memory_space<vmem>>, vector<6x128xf32>
    %c0_1 = arith.constant 0 : index
    %c0_2 = arith.constant 0 : index
    %1 = vector.load %arg3[%c0_1, %c0_2] : memref<32x4xf32, #tpu.memory_space<vmem>>, vector<32x4xf32>
    %c0_3 = arith.constant 0 : index
    %c0_4 = arith.constant 0 : index
    %c0_5 = arith.constant 0 : index
    %2 = vector.load %arg2[%c0_3, %c0_4, %c0_5] : memref<4x32x32xf32, #tpu.memory_space<vmem>>, vector<1x32x6xf32>
    %3 = vector.shape_cast %2 : vector<1x32x6xf32> to vector<32x6xf32>
    %cst = arith.constant dense<0.000000e+00> : vector<32x128xf32>
    %4 = tpu.matmul %3, %0, %cst {dimension_numbers = #tpu.dot_dimension_numbers<[1], [0], [0], [1], [0, 0, 1, 1], [], []>} : vector<32x6xf32>, vector<6x128xf32>, vector<32x128xf32> -> vector<32x128xf32>
    %5 = vector.extract_strided_slice %1 {offsets = [0, 0], sizes = [32, 1], strides = [1, 1]} : vector<32x4xf32> to vector<32x1xf32>
    %6 = vector.broadcast %5 : vector<32x1xf32> to vector<32x128xf32>
    %7 = arith.addf %4, %6 : vector<32x128xf32>
    %8 = math.tanh %7 : vector<32x128xf32>
    %c1 = arith.constant 1 : index
    %c0_6 = arith.constant 0 : index
    %c0_7 = arith.constant 0 : index
    %9 = vector.load %arg2[%c1, %c0_6, %c0_7] : memref<4x32x32xf32, #tpu.memory_space<vmem>>, vector<1x32x32xf32>
    %10 = vector.shape_cast %9 : vector<1x32x32xf32> to vector<32x32xf32>
    %cst_8 = arith.constant dense<0.000000e+00> : vector<32x128xf32>
    %11 = tpu.matmul %10, %8, %cst_8 {dimension_numbers = #tpu.dot_dimension_numbers<[1], [0], [0], [1], [0, 0, 1, 1], [], []>} : vector<32x32xf32>, vector<32x128xf32>, vector<32x128xf32> -> vector<32x128xf32>
    %12 = vector.extract_strided_slice %1 {offsets = [0, 1], sizes = [32, 1], strides = [1, 1]} : vector<32x4xf32> to vector<32x1xf32>
    %13 = vector.broadcast %12 : vector<32x1xf32> to vector<32x128xf32>
    %14 = arith.addf %11, %13 : vector<32x128xf32>
    %15 = math.tanh %14 : vector<32x128xf32>
    %c2 = arith.constant 2 : index
    %c0_9 = arith.constant 0 : index
    %c0_10 = arith.constant 0 : index
    %16 = vector.load %arg2[%c2, %c0_9, %c0_10] : memref<4x32x32xf32, #tpu.memory_space<vmem>>, vector<1x32x32xf32>
    %17 = vector.shape_cast %16 : vector<1x32x32xf32> to vector<32x32xf32>
    %cst_11 = arith.constant dense<0.000000e+00> : vector<32x128xf32>
    %18 = tpu.matmul %17, %15, %cst_11 {dimension_numbers = #tpu.dot_dimension_numbers<[1], [0], [0], [1], [0, 0, 1, 1], [], []>} : vector<32x32xf32>, vector<32x128xf32>, vector<32x128xf32> -> vector<32x128xf32>
    %19 = vector.extract_strided_slice %1 {offsets = [0, 2], sizes = [32, 1], strides = [1, 1]} : vector<32x4xf32> to vector<32x1xf32>
    %20 = vector.broadcast %19 : vector<32x1xf32> to vector<32x128xf32>
    %21 = arith.addf %18, %20 : vector<32x128xf32>
    %22 = math.tanh %21 : vector<32x128xf32>
    %c3 = arith.constant 3 : index
    %c0_12 = arith.constant 0 : index
    %c0_13 = arith.constant 0 : index
    %23 = vector.load %arg2[%c3, %c0_12, %c0_13] : memref<4x32x32xf32, #tpu.memory_space<vmem>>, vector<1x32x32xf32>
    %24 = vector.shape_cast %23 : vector<1x32x32xf32> to vector<32x32xf32>
    %cst_14 = arith.constant dense<0.000000e+00> : vector<32x128xf32>
    %25 = tpu.matmul %24, %22, %cst_14 {dimension_numbers = #tpu.dot_dimension_numbers<[1], [0], [0], [1], [0, 0, 1, 1], [], []>} : vector<32x32xf32>, vector<32x128xf32>, vector<32x128xf32> -> vector<32x128xf32>
    %26 = vector.extract_strided_slice %1 {offsets = [0, 3], sizes = [32, 1], strides = [1, 1]} : vector<32x4xf32> to vector<32x1xf32>
    %27 = vector.broadcast %26 : vector<32x1xf32> to vector<32x128xf32>
    %28 = arith.addf %25, %27 : vector<32x128xf32>
    %cst_15 = arith.constant dense<0xFF800000> : vector<128xf32>
    %29 = vector.multi_reduction <maximumf>, %28, %cst_15 [0] : vector<32x128xf32> to vector<128xf32>
    %30 = vector.shape_cast %29 : vector<128xf32> to vector<1x128xf32>
    %31 = vector.broadcast %30 : vector<1x128xf32> to vector<32x128xf32>
    %32 = arith.subf %28, %31 : vector<32x128xf32>
    %33 = math.exp %32 : vector<32x128xf32>
    %cst_16 = arith.constant dense<0.000000e+00> : vector<128xf32>
    %34 = vector.multi_reduction <add>, %33, %cst_16 [0] : vector<32x128xf32> to vector<128xf32>
    %35 = vector.shape_cast %34 : vector<128xf32> to vector<1x128xf32>
    %36 = tpu.reciprocal %35 : vector<1x128xf32> -> vector<1x128xf32>
    %37 = vector.broadcast %36 : vector<1x128xf32> to vector<32x128xf32>
    %38 = arith.mulf %33, %37 : vector<32x128xf32>
    %39 = vector.extract_strided_slice %38 {offsets = [0, 0], sizes = [11, 128], strides = [1, 1]} : vector<32x128xf32> to vector<11x128xf32>
    %c0_17 = arith.constant 0 : index
    %c0_18 = arith.constant 0 : index
    %40 = vector.load %arg4[%c0_17, %c0_18] : memref<11x128xf32, #tpu.memory_space<vmem>>, vector<11x128xf32>
    tpu.vector_store %arg4[%c0_17, %c0_18], %39 {strides = array<i32>} : memref<11x128xf32, #tpu.memory_space<vmem>>, vector<11x128xf32>,
    return
  }
  func.func @transform_0(%arg0: i32) -> (i32, i32) {
    %c0_i32 = arith.constant 0 : i32
    %c0_i32_0 = arith.constant 0 : i32
    return %c0_i32, %arg0 : i32, i32
  }
  func.func @transform_1(%arg0: i32) -> (i32, i32, i32) {
    %c0_i32 = arith.constant 0 : i32
    %c0_i32_0 = arith.constant 0 : i32
    %c0_i32_1 = arith.constant 0 : i32
    %c0_i32_2 = arith.constant 0 : i32
    return %c0_i32, %c0_i32_0, %c0_i32_1 : i32, i32, i32
  }
  func.func @transform_2(%arg0: i32) -> (i32, i32) {
    %c0_i32 = arith.constant 0 : i32
    %c0_i32_0 = arith.constant 0 : i32
    %c0_i32_1 = arith.constant 0 : i32
    return %c0_i32, %c0_i32_0 : i32, i32
  }
  func.func @transform_3(%arg0: i32) -> (i32, i32) {
    %c0_i32 = arith.constant 0 : i32
    %c0_i32_0 = arith.constant 0 : i32
    return %c0_i32, %arg0 : i32, i32
  }
}

</mosaic_0001>

<bundles_post_ra>
// kernel: actor_critic_forward.1
= control target key start
LH: loop header
LB: loop body
LE: loop exit
PB: predicated region body
PF: predicated region fallthrough
CT: control target
= control target key end

     0   :  { %vm56_vm0 = vcmask 1045504   ;;  %vm43_vm1 = vcmask 48128   ;;  %v713_v3 = vmov 0   ;;  %vm170_vm2 = vcmask 261120   ;;  %s846_s0 = inlined_call_operand.vmem [shape: f32[6,128], index: 0, kind: input, shape index: {}]   ;;  %s847_s1 = inlined_call_operand.vmem [shape: f32[4,32,32], index: 1, kind: input, shape index: {}]   ;;  %s848_s2 = inlined_call_operand.vmem [shape: f32[32,4], index: 2, kind: input, shape index: {}]   ;;  %s849_s3 = inlined_call_operand.vmem [shape: f32[11,128], index: 3, kind: output, shape index: {}]  }
   0x1   :  { %v14_v0 = vld [vmem:[%s846_s0] sm:$0x3f]  ;;  %v20_v2 = vld [vmem:[%s847_s1 + $0x8] sm:$0xff]  ;;  %672 = vset.pattern.permute.xlu1 %v713_v3  ;;  %671 = vset.pattern.permute.xlu0 %v713_v3  ;;  %v21_v4 = vld [vmem:[%s847_s1 + $0x10] sm:$0xff]  ;;  %v714_v11 = vmov 1   ;;  %v715_v32 = vmov 2  }
   0x2   :  { %v19_v1 = vld [vmem:[%s847_s1] sm:$0xff]  ;;  %609 = vmatprep.subr.msk.mxu0 %vm56_vm0, %v14_v0  ;;  %v753_v5 = vld [vmem:[%s848_s2 + $0x18] sm:$0xff]  ;;  %v759_v6 = vld [vmem:[%s848_s2 + $0x8] sm:$0xff]  ;;  %v716_v54 = vmov 3  }
   0x3   :  { %611 = vmatprep.mubr.msk.f32.mxu0 %vm43_vm1, %v19_v1  ;;  %610 = vmatpush3.msk.msra.mxu0 %vm56_vm0, %v14_v0  ;;  %v766_v7 = vld [vmem:[%s848_s2 + $0x10] sm:$0xff]  ;;  %v22_v8 = vld [vmem:[%s847_s1 + $0x18] sm:$0xff]  ;;  %v775_v9 = vld [vmem:[%s848_s2] sm:$0xff] }
   0x4   :  { %40 = vperm.xlu0 %671, %v753_v5   ;;  %612 = vmatmul.mubr.msk.f32.vlgmr.msra.gmra.mxu0 %vm43_vm1, %v20_v2  ;;  %v556_v10 = vld [vmem:[%s847_s1 + $0x20] sm:$0xff]  ;;  %v557_v28 = vld [vmem:[%s847_s1 + $0x28] sm:$0xff]  ;;  %v558_v29 = vld [vmem:[%s847_s1 + $0x30] sm:$0xff] }
   0x5   :  { %30 = vperm.xlu1 %672, %v759_v6   ;;  %614 = vmatprep.mubr.msk.f32.mxu0 %vm43_vm1, %v21_v4  ;;  %v559_v30 = vld [vmem:[%s847_s1 + $0x38] sm:$0xff]  ;;  %v564_v31 = vld [vmem:[%s847_s1 + $0x40] sm:$0xff]  ;;  %v565_v49 = vld [vmem:[%s847_s1 + $0x48] sm:$0xff] }
   0x6   :  { %625 = vmatprep.mubr.msk.f32.mxu1 %vm170_vm2, %v556_v10  ;;  %v566_v50 = vld [vmem:[%s847_s1 + $0x50] sm:$0xff]  ;;  %v567_v51 = vld [vmem:[%s847_s1 + $0x58] sm:$0xff]  ;;  %v572_v52 = vld [vmem:[%s847_s1 + $0x60] sm:$0xff] }
   0x7   :  { %v574_v53 = vld [vmem:[%s847_s1 + $0x70] sm:$0xff] }
   0x8   :  { %35 = vperm.xlu0 %671, %v766_v7   ;;  %615 = vmatmul.mubr.msk.f32.gmra.mxu0 %vm43_vm1, %v22_v8  ;;  %v575_v8 = vld [vmem:[%s847_s1 + $0x78] sm:$0xff] }
   0x9   :  { %25 = vperm.xlu1 %672, %v775_v9   ;;  %639 = vmatprep.mubr.msk.f32.mxu0 %vm170_vm2, %v564_v31 }
   0xc   :  { %673 = vset.pattern.permute.xlu0 %v714_v11 }
   0xd   :  { %674 = vset.pattern.permute.xlu1 %v714_v11  ;;  %167 = vperm.xlu0 %673, %v753_v5  }
   0xe   :  { %163 = vperm.xlu1 %674, %v766_v7  }
  0x11   :  { %155 = vperm.xlu0 %673, %v775_v9  }
  0x12   :  { %159 = vperm.xlu1 %674, %v759_v6  }
  0x15   :  { %676 = vset.pattern.permute.xlu0 %v715_v32 }
  0x16   :  { %675 = vset.pattern.permute.xlu1 %v715_v32  ;;  %286 = vperm.xlu0 %676, %v766_v7  }
  0x17   :  { %290 = vperm.xlu1 %675, %v753_v5  }
  0x1a   :  { %677 = vset.pattern.permute.xlu0 %v716_v54 }
  0x1b   :  { %282 = vperm.xlu1 %675, %v759_v6   ;;  %400 = vperm.xlu0 %677, %v775_v9  }
  0x1f   :  { %278 = vperm.xlu1 %675, %v775_v9   ;;  %412 = vperm.xlu0 %677, %v753_v5  }
  0x23   :  { %678 = vset.pattern.permute.xlu1 %v716_v54 }
  0x24   :  { %404 = vperm.xlu1 %678, %v759_v6  }
  0x28   :  { %408 = vperm.xlu1 %678, %v766_v7   ;;  %v573_v7 = vld [vmem:[%s847_s1 + $0x68] sm:$0xff] }
  0x7f   :  { %v41_v12 = vpop.permute.xlu0 %40 }
  0x80   :  { %v31_v13 = vpop.permute.xlu1 %30 }
  0x83   :  { %v36_v17 = vpop.permute.xlu0 %35 }
  0x84   :  { %v26_v19 = vpop.permute.xlu1 %25 }
  0x88   :  { %v168_v34 = vpop.permute.xlu0 %167 }
  0x89   :  { %v164_v33 = vpop.permute.xlu1 %163 }
  0x8c   :  { %v156_v40 = vpop.permute.xlu0 %155 }
  0x8d   :  { %v160_v37 = vpop.permute.xlu1 %159 }
  0x91   :  { %v287_v60 = vpop.permute.xlu0 %286 }
  0x92   :  { %v291_v55 = vpop.permute.xlu1 %290 }
  0x96   :  { %v283_v56 = vpop.permute.xlu1 %282  ;;  %v401_v9 = vpop.permute.xlu0 %400 }
  0x9a   :  { %v279_v62 = vpop.permute.xlu1 %278 }
  0x9f   :  { %v405_v10 = vpop.permute.xlu1 %404 }
  0xc4   :  { %v613_v14 = vpop.f32.mrf.mxu0 }
  0xc5   :  { %v132_v21 = vadd.f32 %v613_v14, %v31_v13  ;;  %v413_v13 = vpop.permute.xlu0 %412  ;;  %v409_v14 = vpop.permute.xlu1 %408 }
  0xc6   :  { %v126_v15 = vpop.f32.mrf.mxu0 }
  0xc7   :  { %v127_v23 = vadd.f32 %v126_v15, %v26_v19 }
  0xc8   :  { %v616_v16 = vpop.f32.mrf.mxu0 }
  0xc9   :  { %v142_v18 = vadd.f32 %v616_v16, %v41_v12 }
  0xca   :  { %v136_v20 = vpop.f32.mrf.mxu0 }
  0xcb   :  { %679 = vtanh.f32 %v142_v18  ;;  %v137_v22 = vadd.f32 %v136_v20, %v36_v17 }
  0xcd   :  { %681 = vtanh.f32 %v137_v22 }
  0xce   :  { %683 = vtanh.f32 %v132_v21 }
  0xcf   :  { %685 = vtanh.f32 %v127_v23 }
  0xd8   :  { %v680_v24 = vpop.eup %679 }
  0xd9   :  { %617 = vmatprep.subr.mxu1 %v680_v24 }
  0xda   :  { %v682_v25 = vpop.eup %681  ;;  %618 = vmatpush3.msra.mxu1 %v680_v24 }
  0xdb   :  { %619 = vmatprep.subr.mxu1 %v682_v25  ;;  %v684_v26 = vpop.eup %683 }
  0xdc   :  { %620 = vmatpush3.msra.mxu1 %v682_v25  ;;  %v686_v27 = vpop.eup %685 }
  0xdd   :  { %621 = vmatprep.subr.mxu1 %v684_v26 }
  0xde   :  { %622 = vmatpush3.msra.mxu1 %v684_v26 }
  0xdf   :  { %623 = vmatprep.subr.mxu1 %v686_v27 }
  0xe0   :  { %624 = vmatpush3.msra.mxu1 %v686_v27 }
  0xe1   :  { %626 = vmatmul.mubr.msk.f32.vlgmr.msra.gmra.mxu1 %vm170_vm2, %v557_v28 }
  0xe2   :  { %628 = vmatprep.mubr.msk.f32.mxu1 %vm170_vm2, %v558_v29 }
  0xe5   :  { %629 = vmatmul.mubr.msk.f32.gmra.mxu1 %vm170_vm2, %v559_v30 }
  0xe6   :  { %656 = vmatprep.mubr.msk.f32.mxu1 %vm170_vm2, %v574_v53 }
 0x1a1   :  { %v627_v35 = vpop.f32.mrf.mxu1 }
 0x1a2   :  { %v255_v42 = vadd.f32 %v627_v35, %v160_v37 }
 0x1a3   :  { %v249_v36 = vpop.f32.mrf.mxu1 }
 0x1a4   :  { %v250_v44 = vadd.f32 %v249_v36, %v156_v40 }
 0x1a5   :  { %v630_v38 = vpop.f32.mrf.mxu1 }
 0x1a6   :  { %v265_v39 = vadd.f32 %v630_v38, %v168_v34 }
 0x1a7   :  { %v259_v41 = vpop.f32.mrf.mxu1 }
 0x1a8   :  { %687 = vtanh.f32 %v265_v39  ;;  %v260_v43 = vadd.f32 %v259_v41, %v164_v33 }
 0x1aa   :  { %689 = vtanh.f32 %v260_v43 }
 0x1ab   :  { %691 = vtanh.f32 %v255_v42 }
 0x1ac   :  { %693 = vtanh.f32 %v250_v44 }
 0x1b5   :  { %v688_v45 = vpop.eup %687 }
 0x1b6   :  { %631 = vmatprep.subr.mxu0 %v688_v45 }
 0x1b7   :  { %v690_v46 = vpop.eup %689  ;;  %632 = vmatpush3.msra.mxu0 %v688_v45 }
 0x1b8   :  { %633 = vmatprep.subr.mxu0 %v690_v46  ;;  %v692_v47 = vpop.eup %691 }
 0x1b9   :  { %634 = vmatpush3.msra.mxu0 %v690_v46  ;;  %v694_v48 = vpop.eup %693 }
 0x1ba   :  { %635 = vmatprep.subr.mxu0 %v692_v47 }
 0x1bb   :  { %636 = vmatpush3.msra.mxu0 %v692_v47 }
 0x1bc   :  { %637 = vmatprep.subr.mxu0 %v694_v48 }
 0x1bd   :  { %638 = vmatpush3.msra.mxu0 %v694_v48 }
 0x1be   :  { %640 = vmatmul.mubr.msk.f32.vlgmr.msra.gmra.mxu0 %vm170_vm2, %v565_v49 }
 0x1bf   :  { %642 = vmatprep.mubr.msk.f32.mxu0 %vm170_vm2, %v566_v50 }
 0x1c2   :  { %643 = vmatmul.mubr.msk.f32.gmra.mxu0 %vm170_vm2, %v567_v51 }
 0x1c3   :  { %653 = vmatprep.mubr.msk.f32.mxu0 %vm170_vm2, %v572_v52 }
 0x27e   :  { %v641_v57 = vpop.f32.mrf.mxu0 }
 0x27f   :  { %v377_v0 = vadd.f32 %v641_v57, %v283_v56 }
 0x280   :  { %v371_v58 = vpop.f32.mrf.mxu0 }
 0x281   :  { %v372_v2 = vadd.f32 %v371_v58, %v279_v62 }
 0x282   :  { %v644_v59 = vpop.f32.mrf.mxu0 }
 0x283   :  { %v387_v61 = vadd.f32 %v644_v59, %v291_v55 }
 0x284   :  { %v381_v63 = vpop.f32.mrf.mxu0 }
 0x285   :  { %695 = vtanh.f32 %v387_v61  ;;  %v382_v1 = vadd.f32 %v381_v63, %v287_v60 }
 0x287   :  { %697 = vtanh.f32 %v382_v1 }
 0x288   :  { %699 = vtanh.f32 %v377_v0 }
 0x289   :  { %701 = vtanh.f32 %v372_v2 }
 0x292   :  { %v696_v3 = vpop.eup %695 }
 0x293   :  { %645 = vmatprep.subr.mxu0 %v696_v3  ;;  %659 = vmatprep.subr.mxu1 %v696_v3 }
 0x294   :  { %v698_v4 = vpop.eup %697  ;;  %646 = vmatpush3.msra.mxu0 %v696_v3  ;;  %663 = vmatpush3.msra.mxu1 %v696_v3 }
 0x295   :  { %647 = vmatprep.subr.mxu0 %v698_v4  ;;  %660 = vmatprep.subr.mxu1 %v698_v4  ;;  %v700_v5 = vpop.eup %699 }
 0x296   :  { %648 = vmatpush3.msra.mxu0 %v698_v4  ;;  %664 = vmatpush3.msra.mxu1 %v698_v4  ;;  %v702_v6 = vpop.eup %701 }
 0x297   :  { %649 = vmatprep.subr.mxu0 %v700_v5  ;;  %661 = vmatprep.subr.mxu1 %v700_v5 }
 0x298   :  { %650 = vmatpush3.msra.mxu0 %v700_v5  ;;  %665 = vmatpush3.msra.mxu1 %v700_v5 }
 0x299   :  { %651 = vmatprep.subr.mxu0 %v702_v6  ;;  %662 = vmatprep.subr.mxu1 %v702_v6 }
 0x29a   :  { %652 = vmatpush3.msra.mxu0 %v702_v6  ;;  %666 = vmatpush3.msra.mxu1 %v702_v6 }
 0x29b   :  { %654 = vmatmul.mubr.msk.f32.vlgmr.msra.gmra.mxu0 %vm170_vm2, %v573_v7  ;;  %657 = vmatmul.mubr.msk.f32.vlgmr.msra.gmra.mxu1 %vm170_vm2, %v575_v8 }
 0x35b   :  { %v655_v11 = vpop.f32.mrf.mxu0  ;;  %v658_v12 = vpop.f32.mrf.mxu1 }
 0x35c   :  { %v499_v17 = vadd.f32 %v655_v11, %v405_v10  ;;  %v509_v18 = vadd.f32 %v658_v12, %v413_v13 }
 0x35d   :  { %v493_v15 = vpop.f32.mrf.mxu0  ;;  %v503_v16 = vpop.f32.mrf.mxu1 }
 0x35e   :  { %v494_v19 = vadd.f32 %v493_v15, %v401_v9  ;;  %v504_v20 = vadd.f32 %v503_v16, %v409_v14 }
 0x360   :  { %v512_v21 = vmax.f32 %v494_v19, %v499_v17  ;;  %v513_v22 = vmax.f32 %v504_v20, %v509_v18 }
 0x362   :  { %v514_v23 = vmax.f32 %v512_v21, %v513_v22 }
 0x364   :  { %v515_v24 = vrot.slane %v514_v23, 4 }
 0x366   :  { %v516_v25 = vmax.f32 %v514_v23, %v515_v24 }
 0x368   :  { %v517_v26 = vrot.slane %v516_v25, 2 }
 0x36a   :  { %v518_v27 = vmax.f32 %v516_v25, %v517_v26 }
 0x36c   :  { %v519_v28 = vrot.slane %v518_v27, 1 }
 0x36e   :  { %v520_v29 = vmax.f32 %v518_v27, %v519_v28 }
 0x370   :  { %v521_v30 = vsub.f32 %v494_v19, %v520_v29  ;;  %v522_v31 = vsub.f32 %v499_v17, %v520_v29  ;;  %v523_v32 = vsub.f32 %v504_v20, %v520_v29  ;;  %v524_v33 = vsub.f32 %v509_v18, %v520_v29 }
 0x372   :  { %v525_v34 = vmul.f32 1.442695, %v521_v30  ;;  %v527_v35 = vmul.f32 1.442695, %v522_v31  ;;  %v529_v36 = vmul.f32 1.442695, %v523_v32 }
 0x373   :  { %v531_v37 = vmul.f32 1.442695, %v524_v33 }
 0x374   :  { %703 = vpow2.f32 %v525_v34 }
 0x375   :  { %705 = vpow2.f32 %v527_v35 }
 0x376   :  { %707 = vpow2.f32 %v529_v36 }
 0x377   :  { %709 = vpow2.f32 %v531_v37 }
 0x381   :  { %v704_v38 = vpop.eup %703 }
 0x382   :  { %v706_v39 = vpop.eup %705 }
 0x383   :  { %v533_v40 = vadd.f32 %v706_v39, %v704_v38  ;;  %v708_v41 = vpop.eup %707 }
 0x384   :  { %v710_v43 = vpop.eup %709 }
 0x385   :  { %v534_v42 = vadd.f32 %v708_v41, %v533_v40 }
 0x387   :  { %v535_v44 = vadd.f32 %v710_v43, %v534_v42 }
 0x389   :  { %v536_v45 = vrot.slane %v535_v44, 4 }
 0x38b   :  { %v537_v46 = vadd.f32 %v536_v45, %v535_v44 }
 0x38d   :  { %v538_v47 = vrot.slane %v537_v46, 2 }
 0x38f   :  { %v539_v48 = vadd.f32 %v538_v47, %v537_v46 }
 0x391   :  { %v540_v49 = vrot.slane %v539_v48, 1 }
 0x393   :  { %v541_v50 = vadd.f32 %v540_v49, %v539_v48 }
 0x395   :  { %711 = vrcp.f32 %v541_v50 }
 0x3a2   :  { %v712_v51 = vpop.eup %711 }
 0x3a3   :  { %v543_v52 = vmul.f32 %v712_v51, %v704_v38  ;;  %v544_v53 = vmul.f32 %v712_v51, %v706_v39 }
 0x3a5   :  { %545 = vst [vmem:[%s849_s3] sm:$0xff] %v543_v52  ;;  %546 = vst [vmem:[%s849_s3 + $0x8] sm:$0x7] %v544_v53 }

</bundles_post_ra>
